<compile_context>
chip_gen: v5e
topology: v5e:2x2
jax: 0.10.0
libtpu: 0.0.40
codegen_flags: <defaults>
</compile_context>

<pallas_src>
import jax
import jax.numpy as jnp
from jax import lax
from jax.experimental import pallas as pl
from jax.experimental.pallas import tpu as pltpu


def _make_ssa_kernel(use_slab):
    """Kernel factory; `use_slab` toggles the VMEM-resident x slab (single HBM read)."""

    def kernel(w_ref, x_ref, o_ref, acc_ref, m_ref, *rest):
        # w_ref:   VMEM (C, C) compute-dtype weight, gamma already folded in
        # x_ref/o_ref: VMEM (1, C, tL) tiles of the per-batch slab (x dtype)
        # acc_ref: VMEM (C, C) f32 scratch      -- xxT accumulator
        # m_ref:   VMEM (C, C) compute-dtype    -- M = xxT @ (gamma*W)
        # rest[0]: VMEM (nL, C, tL) x-dtype slab (only when use_slab)
        slab_ref = rest[0] if use_slab else None
        p = pl.program_id(1)   # phase: 0 = accumulate xxT, 1 = emit output
        l = pl.program_id(2)   # spatial tile index

        @pl.when((p == 0) & (l == 0))
        def _init():
            acc_ref[...] = jnp.zeros_like(acc_ref)

        @pl.when(p == 0)
        def _accumulate():
            x = x_ref[0]                                    # (C, tL), x dtype
            if use_slab:
                slab_ref[l] = x                             # keep tile resident for phase 1
            xc = x.astype(w_ref.dtype)                      # bf16 MXU path if requested
            # xxT += x @ x^T, contracting the last dim of both operands (no transpose).
            acc_ref[...] += lax.dot_general(
                xc, xc,
                dimension_numbers=(((1,), (1,)), ((), ())),
                preferred_element_type=jnp.float32)

        @pl.when((p == 1) & (l == 0))
        def _fold_weight():
            # M = xxT @ (gamma * W_sn)  -- tiny (C,C,C) matmul, once per batch element.
            m = jnp.dot(acc_ref[...].astype(w_ref.dtype), w_ref[...],
                        preferred_element_type=jnp.float32)
            m_ref[...] = m.astype(m_ref.dtype)

        @pl.when(p == 1)
        def _emit():
            x = slab_ref[l] if use_slab else x_ref[0]       # (C, tL), x dtype
            attn = jnp.dot(m_ref[...], x.astype(m_ref.dtype),
                           preferred_element_type=jnp.float32)
            o_ref[0] = (attn + x.astype(jnp.float32)).astype(o_ref.dtype)

    return kernel


def _vmem_capacity_bytes():
    """Physical per-core VMEM (64 MiB v7x, 128 MiB v5e/v6e); conservative fallback."""
    try:
        info = pltpu.get_tpu_info()
        cap = getattr(info, "vmem_capacity_bytes", None)
        if cap:
            return int(cap)
    except Exception:
        pass
    return 64 << 20


def _spectral_normalize(w, key, n_power_iterations=1, eps=1e-12):
    # Parameter-prep glue (plain JAX), mirroring torch.nn.utils.spectral_norm on a (C, C)
    # weight: one power iteration from a random normalized u.
    # TODO(synk): torch's spectral_norm persists u across forward passes; here u is
    # re-drawn per call from sn_key, so sigma may differ from a long-running torch module.
    c_out, _ = w.shape
    u = jax.random.normal(key, (c_out,), dtype=jnp.float32)
    u = u / jnp.maximum(jnp.linalg.norm(u), eps)
    v = None
    for _ in range(n_power_iterations):
        v = w.T @ u
        v = v / jnp.maximum(jnp.linalg.norm(v), eps)
        u = w @ v
        u = u / jnp.maximum(jnp.linalg.norm(u), eps)
    sigma = u @ (w @ v)
    return w / sigma


def simple_self_attention(x_nchw, weight, gamma, *, symmetric=False, sn_key=None,
                          mxu_dtype=None):
    """weight: (C, C, 1) conv1d weight (pre spectral norm); gamma: scalar param.

    mxu_dtype: optional MXU operand dtype (e.g. jnp.bfloat16) — recommended for large C
    where the kernel becomes compute-bound; default keeps the input dtype exactly.
    """
    N, C, H, Wd = x_nchw.shape
    L = H * Wd

    w = weight.reshape(C, C).astype(jnp.float32)
    if sn_key is None:
        sn_key = jax.random.PRNGKey(42)
    w_sn = _spectral_normalize(w, sn_key)
    if symmetric:
        # matches the module's symmetrization of the (normalized) weight matrix
        w_sn = (w_sn + w_sn.T) / 2.0

    compute_dtype = jnp.dtype(mxu_dtype) if mxu_dtype is not None else jnp.dtype(x_nchw.dtype)
    # Fold gamma into the tiny weight on the host: xxT @ (gamma*W) == gamma*(xxT @ W).
    w_eff = (jnp.asarray(gamma, jnp.float32) * w_sn).astype(compute_dtype)

    # Keep x (and the output) in the caller's dtype; matmuls accumulate in f32 in-kernel.
    x = x_nchw.reshape(N, C, L)
    x_itemsize = jnp.dtype(x.dtype).itemsize
    cd_itemsize = jnp.dtype(compute_dtype).itemsize

    # Pad L to a lane multiple; zero columns are exact no-ops for xxT / the emit pass and
    # the padded output columns are sliced off below.
    L_pad = ((L + 127) // 128) * 128
    if L_pad != L:
        x = jnp.pad(x, ((0, 0), (0, 0), (0, L_pad - L)))

    # --- Per-generation VMEM budgeting --------------------------------------------------
    vmem_cap = _vmem_capacity_bytes()
    budget = int(vmem_cap * 0.70)                 # headroom for pipeline/compiler scratch

    fixed = (2 * C * C * cd_itemsize              # double-buffered constant weight block
             + C * C * 4                          # f32 xxT accumulator
             + C * C * cd_itemsize)               # M scratch
    slab_bytes = C * L_pad * x_itemsize           # per-batch x slab (x dtype, exact residual)
    min_tiles = 4 * C * 128 * x_itemsize          # 2 in + 2 out buffers at the smallest tile
    use_slab = (fixed + slab_bytes + min_tiles) <= budget

    # Spatial tile: largest lane-aligned divisor of L_pad that fits the budget.
    tl = 128
    for cand in (4096, 2048, 1024, 512, 256, 128):
        if L_pad % cand != 0:
            continue
        tot = fixed + 4 * C * cand * x_itemsize + (slab_bytes if use_slab else 0)
        if tot <= budget:
            tl = cand
            break
    nl = L_pad // tl

    est = fixed + 4 * C * tl * x_itemsize + (slab_bytes if use_slab else 0)
    # Never exceed ~85% of physical VMEM (the old 96 MiB cap broke on v7x's 64 MiB).
    vmem_limit = int(min(int(0.85 * vmem_cap), max(32 << 20, 2 * est + (4 << 20))))

    scratch = [
        pltpu.VMEM((C, C), jnp.float32),     # xxT accumulator
        pltpu.VMEM((C, C), compute_dtype),   # M = xxT @ (gamma*W)
    ]
    if use_slab:
        scratch.append(pltpu.VMEM((nl, C, tl), x.dtype))   # resident per-batch x slab

    if use_slab:
        # Phase 1 input DMAs collapse to one resident block; x is read from HBM once.
        x_index_map = lambda b, p, l: (b, 0, l * (1 - p))
    else:
        x_index_map = lambda b, p, l: (b, 0, l)

    out = pl.pallas_call(
        _make_ssa_kernel(use_slab),
        out_shape=jax.ShapeDtypeStruct((N, C, L_pad), x.dtype),
        grid=(N, 2, nl),
        in_specs=[
            pl.BlockSpec((C, C), lambda b, p, l: (0, 0)),          # shared (C, C) weight
            pl.BlockSpec((1, C, tl), x_index_map),                 # x spatial tile
        ],
        # l * p pins the output block to (b, 0, 0) during the accumulate phase so the
        # pipeline never flushes an unwritten tile; phase 1 then walks the real tiles.
        out_specs=pl.BlockSpec((1, C, tl), lambda b, p, l: (b, 0, l * p)),
        scratch_shapes=scratch,
        compiler_params=pltpu.CompilerParams(
            dimension_semantics=("parallel", "arbitrary", "arbitrary"),
            vmem_limit_bytes=vmem_limit),
    )(w_eff, x)

    if L_pad != L:
        out = out[:, :, :L]
    return out.reshape(N, C, H, Wd), w_sn


def _reference(x_nchw, w_sn, gamma):
    N, C, H, Wd = x_nchw.shape
    x = x_nchw.reshape(N, C, -1).astype(jnp.float32)
    convx = jnp.einsum('oc,ncl->nol', w_sn, x)
    xxT = jnp.einsum('ncl,nkl->nck', x, x)
    o = gamma * jnp.einsum('nck,nkl->ncl', xxT, convx) + x
    return o.reshape(N, C, H, Wd)


if __name__ == "__main__":
    key = jax.random.PRNGKey(0)
    k_x, k_w, k_u = jax.random.split(key, 3)

    N, C, H, W = 2, 4, 16, 16
    x = jax.random.normal(k_x, (N, C, H, W), dtype=jnp.float32)

    # Conv1d(C, C, 1, bias=False) weight, kaiming_normal_ (fan_in = C*k = C)
    weight = jax.random.normal(k_w, (C, C, 1), dtype=jnp.float32) * jnp.sqrt(2.0 / C)

    # gamma is initialized to 0.0 in the module (output == input); also test nonzero gamma.
    gamma0 = jnp.float32(0.0)
    out0, w_sn = simple_self_attention(x, weight, gamma0, sn_key=k_u)
    out0 = jax.block_until_ready(out0)
    ref0 = _reference(x, w_sn, gamma0)
    assert jnp.allclose(out0, ref0, atol=1e-5, rtol=1e-5)

    gamma1 = jnp.float32(0.5)
    out1, w_sn1 = simple_self_attention(x, weight, gamma1, sn_key=k_u)
    out1 = jax.block_until_ready(out1)
    ref1 = _reference(x, w_sn1, gamma1)
    assert jnp.allclose(out1, ref1, atol=1e-4, rtol=1e-4)

    # symmetric variant smoke test
    out2, w_sn2 = simple_self_attention(x, weight, gamma1, symmetric=True, sn_key=k_u)
    out2 = jax.block_until_ready(out2)
    ref2 = _reference(x, w_sn2, gamma1)
    assert jnp.allclose(out2, ref2, atol=1e-4, rtol=1e-4)

    # bf16 MXU fast path (recommended when compute-bound); loose tolerances vs f32 reference.
    out3, w_sn3 = simple_self_attention(x, weight, gamma1, sn_key=k_u,
                                        mxu_dtype=jnp.bfloat16)
    out3 = jax.block_until_ready(out3)
    ref3 = _reference(x, w_sn3, gamma1)
    scale = float(jnp.max(jnp.abs(ref3)))
    assert jnp.allclose(out3, ref3, atol=5e-2 * scale, rtol=5e-2)

    # Non-lane-aligned spatial extent exercises the L zero-padding path (H*W = 225).
    x5 = jax.random.normal(k_x, (1, 4, 15, 15), dtype=jnp.float32)
    out5, w_sn5 = simple_self_attention(x5, weight, gamma1, sn_key=k_u)
    out5 = jax.block_until_ready(out5)
    ref5 = _reference(x5, w_sn5, gamma1)
    assert jnp.allclose(out5, ref5, atol=1e-4, rtol=1e-4)

    print("KERNEL_OK")
</pallas_src>

<mosaic_0001>
module attributes {stable_mosaic.version = 11 : i64} {
  func.func @kernel(%arg0: i32, %arg1: i32, %arg2: i32, %arg3: memref<4x4xf32, #tpu.memory_space<vmem>>, %arg4: memref<1x4x256xf32, #tpu.memory_space<vmem>>, %arg5: memref<1x4x256xf32, #tpu.memory_space<vmem>>, %arg6: memref<4x4xf32, #tpu.memory_space<vmem>>, %arg7: memref<4x4xf32, #tpu.memory_space<vmem>>, %arg8: memref<1x4x256xf32, #tpu.memory_space<vmem>>) attributes {dimension_semantics = [#tpu.dimension_semantics<parallel>, #tpu.dimension_semantics<arbitrary>, #tpu.dimension_semantics<arbitrary>], iteration_bounds = array<i64: 2, 2, 1>, scalar_prefetch = 0 : i64, scratch_operands = 3 : i64, tpu.core_type = #tpu.core_type<tc>, window_params = [{pipeline_mode = #tpu.pipeline_mode<synchronous>, transform_indices = @transform_0, window_bounds = array<i64: 4, 4>}, {transform_indices = @transform_1, window_bounds = array<i64: 1, 4, 256>}, {transform_indices = @transform_2, window_bounds = array<i64: 1, 4, 256>}]} {
    %c0_i32 = arith.constant 0 : i32
    %0 = arith.cmpi eq, %arg1, %c0_i32 : i32
    %c0_i32_0 = arith.constant 0 : i32
    %1 = arith.cmpi eq, %arg2, %c0_i32_0 : i32
    %2 = arith.andi %0, %1 : i1
    %3 = arith.extui %2 : i1 to i32
    %c0_i32_1 = arith.constant 0 : i32
    %4 = arith.cmpi ne, %3, %c0_i32_1 : i32
    scf.if %4 {
      %cst = arith.constant 0.000000e+00 : f32
      %16 = vector.broadcast %cst : f32 to vector<4x4xf32>
      %c0 = arith.constant 0 : index
      %c0_8 = arith.constant 0 : index
      %17 = vector.load %arg6[%c0, %c0_8] : memref<4x4xf32, #tpu.memory_space<vmem>>, vector<4x4xf32>
      tpu.vector_store %arg6[%c0, %c0_8], %16 {strides = array<i32>} : memref<4x4xf32, #tpu.memory_space<vmem>>, vector<4x4xf32>,
    } else {
    }
    %c0_i32_2 = arith.constant 0 : i32
    %5 = arith.cmpi eq, %arg1, %c0_i32_2 : i32
    %6 = arith.extui %5 : i1 to i32
    %c0_i32_3 = arith.constant 0 : i32
    %7 = arith.cmpi ne, %6, %c0_i32_3 : i32
    scf.if %7 {
      %c0 = arith.constant 0 : index
      %c0_8 = arith.constant 0 : index
      %c0_9 = arith.constant 0 : index
      %16 = vector.load %arg4[%c0, %c0_8, %c0_9] : memref<1x4x256xf32, #tpu.memory_space<vmem>>, vector<1x4x256xf32>
      %17 = vector.shape_cast %16 : vector<1x4x256xf32> to vector<4x256xf32>
      %18 = arith.index_cast %arg2 : i32 to index
      %c0_10 = arith.constant 0 : index
      %c0_11 = arith.constant 0 : index
      %19 = vector.load %arg8[%18, %c0_10, %c0_11] : memref<1x4x256xf32, #tpu.memory_space<vmem>>, vector<1x4x256xf32>
      %20 = vector.shape_cast %19 : vector<1x4x256xf32> to vector<4x256xf32>
      %21 = vector.shape_cast %17 : vector<4x256xf32> to vector<1x4x256xf32>
      tpu.vector_store %arg8[%18, %c0_10, %c0_11], %21 {strides = array<i32>} : memref<1x4x256xf32, #tpu.memory_space<vmem>>, vector<1x4x256xf32>,
      %c0_12 = arith.constant 0 : index
      %c0_13 = arith.constant 0 : index
      %22 = vector.load %arg6[%c0_12, %c0_13] : memref<4x4xf32, #tpu.memory_space<vmem>>, vector<4x4xf32>
      %cst = arith.constant dense<0.000000e+00> : vector<4x4xf32>
      %23 = tpu.matmul %17, %17, %cst {dimension_numbers = #tpu.dot_dimension_numbers<[1], [1], [0], [0], [0, 0, 1, 0], [], []>} : vector<4x256xf32>, vector<4x256xf32>, vector<4x4xf32> -> vector<4x4xf32>
      %24 = arith.addf %22, %23 : vector<4x4xf32>
      %c0_14 = arith.constant 0 : index
      %c0_15 = arith.constant 0 : index
      %25 = vector.load %arg6[%c0_14, %c0_15] : memref<4x4xf32, #tpu.memory_space<vmem>>, vector<4x4xf32>
      tpu.vector_store %arg6[%c0_14, %c0_15], %24 {strides = array<i32>} : memref<4x4xf32, #tpu.memory_space<vmem>>, vector<4x4xf32>,
    } else {
    }
    %c1_i32 = arith.constant 1 : i32
    %8 = arith.cmpi eq, %arg1, %c1_i32 : i32
    %c0_i32_4 = arith.constant 0 : i32
    %9 = arith.cmpi eq, %arg2, %c0_i32_4 : i32
    %10 = arith.andi %8, %9 : i1
    %11 = arith.extui %10 : i1 to i32
    %c0_i32_5 = arith.constant 0 : i32
    %12 = arith.cmpi ne, %11, %c0_i32_5 : i32
    scf.if %12 {
      %c0 = arith.constant 0 : index
      %c0_8 = arith.constant 0 : index
      %16 = vector.load %arg6[%c0, %c0_8] : memref<4x4xf32, #tpu.memory_space<vmem>>, vector<4x4xf32>
      %c0_9 = arith.constant 0 : index
      %c0_10 = arith.constant 0 : index
      %17 = vector.load %arg3[%c0_9, %c0_10] : memref<4x4xf32, #tpu.memory_space<vmem>>, vector<4x4xf32>
      %cst = arith.constant dense<0.000000e+00> : vector<4x4xf32>
      %18 = tpu.matmul %16, %17, %cst {dimension_numbers = #tpu.dot_dimension_numbers<[1], [0], [0], [1], [0, 0, 1, 1], [], []>} : vector<4x4xf32>, vector<4x4xf32>, vector<4x4xf32> -> vector<4x4xf32>
      %c0_11 = arith.constant 0 : index
      %c0_12 = arith.constant 0 : index
      %19 = vector.load %arg7[%c0_11, %c0_12] : memref<4x4xf32, #tpu.memory_space<vmem>>, vector<4x4xf32>
      tpu.vector_store %arg7[%c0_11, %c0_12], %18 {strides = array<i32>} : memref<4x4xf32, #tpu.memory_space<vmem>>, vector<4x4xf32>,
    } else {
    }
    %c1_i32_6 = arith.constant 1 : i32
    %13 = arith.cmpi eq, %arg1, %c1_i32_6 : i32
    %14 = arith.extui %13 : i1 to i32
    %c0_i32_7 = arith.constant 0 : i32
    %15 = arith.cmpi ne, %14, %c0_i32_7 : i32
    scf.if %15 {
      %16 = arith.index_cast %arg2 : i32 to index
      %c0 = arith.constant 0 : index
      %c0_8 = arith.constant 0 : index
      %17 = vector.load %arg8[%16, %c0, %c0_8] : memref<1x4x256xf32, #tpu.memory_space<vmem>>, vector<1x4x256xf32>
      %18 = vector.shape_cast %17 : vector<1x4x256xf32> to vector<4x256xf32>
      %c0_9 = arith.constant 0 : index
      %c0_10 = arith.constant 0 : index
      %19 = vector.load %arg7[%c0_9, %c0_10] : memref<4x4xf32, #tpu.memory_space<vmem>>, vector<4x4xf32>
      %cst = arith.constant dense<0.000000e+00> : vector<4x256xf32>
      %20 = tpu.matmul %19, %18, %cst {dimension_numbers = #tpu.dot_dimension_numbers<[1], [0], [0], [1], [0, 0, 1, 1], [], []>} : vector<4x4xf32>, vector<4x256xf32>, vector<4x256xf32> -> vector<4x256xf32>
      %21 = arith.addf %20, %18 : vector<4x256xf32>
      %c0_11 = arith.constant 0 : index
      %c0_12 = arith.constant 0 : index
      %c0_13 = arith.constant 0 : index
      %22 = vector.load %arg5[%c0_11, %c0_12, %c0_13] : memref<1x4x256xf32, #tpu.memory_space<vmem>>, vector<1x4x256xf32>
      %23 = vector.shape_cast %22 : vector<1x4x256xf32> to vector<4x256xf32>
      %24 = vector.shape_cast %21 : vector<4x256xf32> to vector<1x4x256xf32>
      tpu.vector_store %arg5[%c0_11, %c0_12, %c0_13], %24 {strides = array<i32>} : memref<1x4x256xf32, #tpu.memory_space<vmem>>, vector<1x4x256xf32>,
    } else {
    }
    return
  }
  func.func @transform_0(%arg0: i32, %arg1: i32, %arg2: i32) -> (i32, i32) {
    %c0_i32 = arith.constant 0 : i32
    %c0_i32_0 = arith.constant 0 : i32
    %c0_i32_1 = arith.constant 0 : i32
    return %c0_i32, %c0_i32_0 : i32, i32
  }
  func.func @transform_1(%arg0: i32, %arg1: i32, %arg2: i32) -> (i32, i32, i32) {
    %c1_i32 = arith.constant 1 : i32
    %0 = arith.subi %c1_i32, %arg1 : i32
    %1 = arith.muli %arg2, %0 : i32
    %c0_i32 = arith.constant 0 : i32
    %c0_i32_0 = arith.constant 0 : i32
    return %arg0, %c0_i32, %1 : i32, i32, i32
  }
  func.func @transform_2(%arg0: i32, %arg1: i32, %arg2: i32) -> (i32, i32, i32) {
    %0 = arith.muli %arg2, %arg1 : i32
    %c0_i32 = arith.constant 0 : i32
    %c0_i32_0 = arith.constant 0 : i32
    return %arg0, %c0_i32, %0 : i32, i32, i32
  }
}

</mosaic_0001>

<bundles_post_ra>
// kernel: tpu_custom_call.1
= control target key start
LH: loop header
LB: loop body
LE: loop exit
PB: predicated region body
PF: predicated region fallthrough
CT: control target
= control target key end

     0   :  { %s1003_s0 = inlined_call_operand.hbm [shape: f32[4,4], index: 0, kind: input, shape index: {}]   ;;  %s1004_s1 = inlined_call_operand.hbm [shape: f32[2,4,256], index: 1, kind: input, shape index: {}]   ;;  %s1005_s2 = inlined_call_operand.hbm [shape: f32[2,4,256], index: 2, kind: output, shape index: {}]  }
   0x1   :  { %1006 = sst [smem:[#allocation14_spill]] %s1003_s0 }
   0x2   :  { %7 = vsyncpa [#allocation6], 0 }
   0x3   :  { %8 = vsyncpa [#allocation9], 0 }
   0x4   :  { %10 = vsyncpa [#allocation9 + $0x1], 0 }
   0x5   :  { %11 = vsyncpa [#allocation7], 0 }
   0x6   :  { %13 = vsyncpa [#allocation7 + $0x1], 0  ;;  %s823_s9 = smov 0   ;;  %s825_s10 = smov 0  }
   0x7   :  { %s827_s11 = smov 0   ;;  %s829_s12 = smov 0  }
   0x8   :  { %s831_s13 = smov 0   ;;  %s833_s14 = smov 0  }
   0x9   :  { %s835_s15 = smov 0   ;;  %s837_s16 = smov 0  }
   0xa LB: > { %s521_s17 = sadd.s32 4294967295, %s804_s16   ;;  %s522_s18 = sadd.s32 4294967294, %s804_s16   ;;  %s804_s16 = sphi %s837_s16, %s19_s16   ;;  %s800_s15 = sphi %s835_s15, %s1021_s15   ;;  %s796_s14 = sphi %s833_s14, %s1020_s14   ;;  %s792_s13 = sphi %s831_s13, %s1019_s13   ;;  %s788_s12 = sphi %s829_s12, %s1018_s12   ;;  %s784_s11 = sphi %s827_s11, %s1017_s11   ;;  %s780_s10 = sphi %s825_s10, %s1016_s10   ;;  %s776_s9 = sphi %s823_s9, %s1015_s9  }
   0xb   : > { %p85_p0 = scmp.ne.s32.totalorder %s780_s10, %s776_s9  ;;  %p867_p1 = scmp.eq.s32.totalorder %s521_s17, 0 }
   0xc   : > { %p871_p2 = scmp.eq.s32.totalorder %s521_s17, 3  ;;  %p119_p3 = scmp.eq.s32.totalorder %s522_s18, 3 }
   0xd   : > { %p877_p4 = por %p867_p1, %p85_p0  ;;  %p523_p5 = scmp.ge.s32.totalorder %s804_s16, 1 }
   0xe   : > { %p882_p6 = por %p119_p3, %p85_p0  ;;  %p126_p7 = scmp.lt.s32.totalorder %s804_s16, 5 }
   0xf   : > { %s1011_s0 = sld [smem:[#allocation14_spill]]  ;;  %s806_s27 = smov [#allocation5]  }
  0x10   : > { %p890_p8 = pnand %p523_p5, %p126_p7  ;;  %s140_s28 = sshll.u32 %s806_s27, 4  ;;  %s141_s28 = int_to_ptr.vmem [resolvable:$true] %s140_s28 }
  0x11   : > { %s34_s29 = sadd.s32 1, %s796_s14  ;;  %s38_s30 = sadd.s32 1, %s800_s15 }
  0x12   : > { %p560_p9 = pneg %p890_p8  ;;  %p36_p11 = scmp.ge.s32.totalorder %s34_s29, 2 }
  0x13   : > { %s72_s3 = sadd.s32 1, %s784_s11  ;;  %p79_p12 = scmp.ne.s32.totalorder %s784_s11, %s780_s10 }
  0x14   : > { %p561_p10 = pnand %p560_p9, %p867_p1  ;;  %s1023_s29 = smov (%p36_p11, %s34_s29), 0 }
  0x15   : > { %s138_s25 = sshll.u32 %s1011_s0, 4  ;;  %s1025_s30 = smov (!%p36_p11, %s38_s30), %s800_s15  ;;  %s139_s25 = int_to_ptr.hbm [resolvable:$true] %s138_s25 }
  0x16   : > { %563 = dma.hbm_to_vmem [thread:$0]  (!%p561_p10), %s139_s25, 64, %s141_s28, [#allocation6]  }
  0x17   : > { %p80_p13 = scmp.eq.s32.totalorder %s804_s16, 0  ;;  %p909_p0 = por %p871_p2, %p79_p12 }
  0x18   : > { %p40_p3 = scmp.ge.s32.totalorder %s1025_s30, 2  ;;  %p573_p5 = scmp.lt.s32.totalorder %s804_s16, 4 }
  0x19   : > { %p914_p7 = por %p80_p13, %p79_p12  ;;  %s151_s6 = sand.u32 1, %s784_s11  }
  0x1a   : > { %s1027_s30 = smov (%p40_p3, %s1025_s30), 0  ;;  %s526_s7 = sshll.u32 %s151_s6, 3 }
  0x1b   : > { %s67_s8 = ssub.s32 %s800_s15, %s1027_s30  ;;  %s548_s17 = sshll.u32 %s800_s15, 3 }
  0x1c   : > { %p70_p9 = scmp.eq.s32.totalorder %s67_s8, 0  ;;  %s164_s23 = scalar_lea.hbm %s1004_s1, %s548_s17 }
  0x1d   : > { %s155_s24 = scalar_lea.vmem [#allocation8], %s526_s7  ;;  %s166_s28 = sshll.u32 %s164_s23, 4  ;;  %s167_s28 = int_to_ptr.hbm [resolvable:$true] %s166_s28 }
  0x1e   : > { %s168_s25 = sshll.u32 %s155_s24, 4  ;;  %p565_p2 = pnand %p573_p5, %p914_p7  ;;  %s169_s25 = int_to_ptr.vmem [resolvable:$true] %s168_s25 }
  0x1f   : > { %s928_s27 = scalar_select %p70_p9, %s784_s11, %s72_s3  }
  0x20   : > { %s152_s0 = scalar_lea.sflag [#allocation9], %s151_s6  ;;  %177 = sbr.rel (%p890_p8) target bundleno = 506 (0x1fa), region = 28 }
  0x21   : > { %567 = dma.hbm_to_vmem [thread:$0]  (!%p565_p2), %s167_s28, 128, %s169_s25, %s152_s0  }
  0x25   : > { %763 = dma.done.wait (%p867_p1), [#allocation6], 64  }
  0x26   : > { %765 = vsyncadd (%p867_p1), [#allocation6], 4294967232  ;;  %s941_s3 = sand.u32 1, %s780_s10  }
  0x27   : > { %s531_s5 = sshll.u32 %s941_s3, 3  ;;  %s185_s7 = scalar_lea.sflag [#allocation9], %s941_s3 }
  0x28   : > { %s188_s8 = scalar_lea.vmem [#allocation8], %s531_s5 }
  0x29   : > { %767 = dma.done.wait (%p877_p4), %s185_s7, 128  }
  0x2a   : > { %769 = vsyncadd (%p877_p4), %s185_s7, 4294967168  ;;  %p215_p8 = scmp.eq.s32.totalorder %s788_s12, 0  ;;  %s950_s0 = scalar_lea.vmem [#allocation10], %s531_s5 }
  0x2b   : > { %vm221_vm0 = vcmask (%p215_p8), 27648   ;;  %v807_v0 = vmov (%p215_p8), 0.0  }
  0x2c   : > { %220 = sbr.rel (!%p215_p8) target bundleno = 49 (0x31), region = 40  ;;  %222 = vst.msk [vmem:[#allocation2] sm:$0xf] (%p215_p8), %vm221_vm0, %v807_v0 }
  0x31 PF: > { %p534_p1 = scmp.ne.s32.totalorder %s788_s12, 0 }
  0x33   : > { %225 = sbr.rel (%p534_p1) target bundleno = 208 (0xd0), region = 44 }
  0x38   : > { %v226_v1 = vld [vmem:[%s188_s8] sm:$0xff]  ;;  %vm284_vm1 = vcmask 27648  }
  0x39   : > { %230 = vst [vmem:[#allocation4] sm:$0xff] %v226_v1  ;;  %v231_v7 = vld [vmem:[#allocation2] sm:$0xf] }
  0x3a   : > { %233 = vst [vmem:[#allocation1] ss:$2 sm:$0xff] %v226_v1 }
  0x41   : > { %v234_v2 = vld.sshfl [vmem:[#allocation1] sm:$0xff pattern:$0x75316420]  ;;  %v235_v3 = vld.sshfl [vmem:[#allocation1 + $0x8] sm:$0xff pattern:$0x75316420] }
  0x42   : > { %238 = vst [vmem:[#allocation1] ss:$2 sm:$0xff] %v226_v1 }
  0x49   : > { %v239_v4 = vld.sshfl [vmem:[#allocation1] sm:$0xff pattern:$0x75316420]  ;;  %v240_v5 = vld.sshfl [vmem:[#allocation1 + $0x8] sm:$0xff pattern:$0x75316420] }
  0x4a   : > { %258 = vmatpush.xpose.msra.mxu0 %v239_v4  ;;  %278 = vmatpush.xpose.msra.mxu1 %v240_v5 }
  0x4d   : > { %259 = vmatmul.f32.vlgmr.msra.gmra.mxu0 %v234_v2  ;;  %279 = vmatmul.f32.vlgmr.msra.gmra.mxu1 %v235_v3 }
  0xca   : > { %v260_v6 = vpop.f32.mrf.mxu0  ;;  %v280_v8 = vpop.f32.mrf.mxu1 }
  0xcb   : > { %v281_v9 = vadd.f32 %v280_v8, %v260_v6 }
  0xcd   : > { %v283_v10 = vadd.f32 %v281_v9, %v231_v7 }
  0xcf   : > { %285 = vst.msk [vmem:[#allocation2] sm:$0xf] %vm284_vm1, %v283_v10 }
  0xd0 PF: > { %p286_p4 = scmp.eq.s32.totalorder %s788_s12, 1 }
  0xd1   : > { %v292_v11 = vld [vmem:[#allocation5] sm:$0xf] (%p286_p4)  ;;  %vm297_vm2 = vcmask (%p286_p4), 1043456   ;;  %vm293_vm3 = vcmask (%p286_p4), 31744   ;;  %vm321_vm4 = vcmask (%p286_p4), 27648  }
  0xd2   : > { %290 = sbr.rel (!%p286_p4) target bundleno = 342 (0x156), region = 48  ;;  %536 = vmatpush.msk.msra.mxu0 (%p286_p4), %vm297_vm2, %v292_v11 }
  0xd6   : > { %v291_v12 = vld [vmem:[#allocation2] sm:$0xf] (%p286_p4) }
  0xd7   : > { %537 = vmatmul.msk.f32.vlgmr.msra.gmra.mxu0 %vm293_vm3, %v291_v12 }
 0x154   : > { %v318_v13 = vpop.f32.mrf.mxu0 }
 0x155   : > { %322 = vst.msk [vmem:[#allocation3] sm:$0xf] %vm321_vm4, %v318_v13 }
 0x156 PF: > { %p538_p10 = scmp.ne.s32.totalorder %s788_s12, 1 }
 0x158   : > { %325 = sbr.rel (%p538_p10) target bundleno = 491 (0x1eb), region = 52 }
 0x15d   : > { %v329_v14 = vld [vmem:[#allocation4] sm:$0xff]  ;;  %vm344_vm5 = vcmask 1043456   ;;  %v330_v15 = vld [vmem:[#allocation3] sm:$0xf]  ;;  %vm340_vm6 = vcmask 31744  }
 0x15e   : > { %332 = vst [vmem:[#allocation1] ss:$2 sm:$0xff] %v329_v14 }
 0x165   : > { %v334_v16 = vld.sshfl [vmem:[#allocation1 + $0x8] sm:$0xff pattern:$0x75316420]  ;;  %v333_v17 = vld.sshfl [vmem:[#allocation1] sm:$0xff pattern:$0x75316420] }
 0x166   : > { %541 = vmatpush.msk.msra.mxu1 %vm344_vm5, %v334_v16  ;;  %335 = vst [vmem:[#allocation1] ss:$2 sm:$0xff] %v329_v14  ;;  %539 = vmatpush.msk.msra.mxu0 %vm344_vm5, %v333_v17 }
 0x167   : > { %542 = vmatmul.msk.f32.vlgmr.msra.gmra.mxu1 %vm340_vm6, %v330_v15  ;;  %540 = vmatmul.msk.f32.vlgmr.msra.gmra.mxu0 %vm340_vm6, %v330_v15 }
 0x16d   : > { %v337_v18 = vld.sshfl [vmem:[#allocation1 + $0x8] sm:$0xff pattern:$0x75316420]  ;;  %v336_v19 = vld.sshfl [vmem:[#allocation1] sm:$0xff pattern:$0x75316420] }
 0x1e4   : > { %v386_v20 = vpop.f32.mrf.mxu1  ;;  %v366_v21 = vpop.f32.mrf.mxu0 }
 0x1e5   : > { %v387_v22 = vadd.f32 %v386_v20, %v337_v18  ;;  %v367_v23 = vadd.f32 %v366_v21, %v336_v19 }
 0x1e7   : > { %v391_v24 = vrot.slane %v387_v22, 4 }
 0x1e9   : > { %v392_v25 = vsel %vm344_vm5, %v367_v23, %v391_v24 }
 0x1ea   : > { %394 = vst [vmem:[%s950_s0] sm:$0xff] %v392_v25 }
 0x1eb PF: > { %s551_s12 = sshll.u32 %s792_s13, 3  ;;  %s412_s6 = sshll.u32 %s950_s0, 4  ;;  %s413_s6 = int_to_ptr.vmem [resolvable:$true] %s412_s6 }
 0x1ec   : > { %s410_s26 = scalar_lea.hbm %s1005_s2, %s551_s12  ;;  %s396_s18 = scalar_lea.sflag [#allocation7], %s941_s3 }
 0x1ed   : > { %s414_s17 = sshll.u32 %s410_s26, 4  ;;  %s722_s13 = scalar_lea.hbm %s1005_s2, 16  ;;  %s415_s17 = int_to_ptr.hbm [resolvable:$true] %s414_s17 }
 0x1ee   : > { %s716_s20 = sshra.s32 %s415_s17, 4  ;;  %s717_s20 = int_to_ptr.hbm [resolvable:$true] %s716_s20 }
 0x1ef   : > { %s718_s23 = scalar_lea.hbm %s717_s20, 8  ;;  %p723_p3 = scmp.lt.s32.totalorder %s717_s20, %s1005_s2 }
 0x1f0   : > { %p719_p11 = scmp.ne.s32.totalorder %s717_s20, %s718_s23  ;;  %p724_p5 = scmp.lt.s32.totalorder %s722_s13, %s718_s23 }
 0x1f2   : > { %p720_p12 = pnand %p719_p11, %p909_p0  ;;  %p725_p7 = por %p724_p5, %p723_p3 }
 0x1f4   : > { %p721_p13 = pneg %p720_p12 }
 0x1f6   : > { %p726_p9 = pnand %p725_p7, %p721_p13 }
 0x1f8   : > { %729 = shalt.err (!%p726_p9)
}
 0x1f9   : > { %558 = dma.vmem_to_hbm [thread:$0]  (%p909_p0), %s413_s6, 128, %s415_s17, %s396_s18  }
 0x1fa PF: > { %p575_p2 = scmp.ge.s32.totalorder %s804_s16, 2  ;;  %s426_s3 = sand.u32 1, %s776_s9  }
 0x1fb   : > { %s427_s7 = scalar_lea.sflag [#allocation7], %s426_s3 }
 0x1fc   : > { %p569_p8 = pnand %p575_p2, %p882_p6 }
 0x1fe   : > { %p570_p1 = pneg %p569_p8 }
 0x200   : > { %771 = dma.done.wait (%p570_p1), %s427_s7, 128  }
 0x201   : > { %773 = vsyncadd (%p570_p1), %s427_s7, 4294967168  ;;  %s19_s16 = sadd.s32 1, %s804_s16   ;;  %s1015_s9 = smov %s780_s10 }
 0x202   : > { %p16_p4 = scmp.ge.s32.totalorder %s19_s16, 6   ;;  %s1016_s10 = smov %s784_s11 }
 0x203   : > { %s1017_s11 = smov %s928_s27  ;;  %s1018_s12 = smov %s796_s14 }
 0x204   : > { %s1019_s13 = smov %s800_s15  ;;  %s1020_s14 = smov %s1023_s29 }
 0x205   : > { %s1021_s15 = smov %s1027_s30  ;;  %18 = sbr.rel (!%p16_p4) target bundleno = 10 (0xa), region = 96 }
 0x20a   :  { %433 = vsyncpa [#allocation6], 1 }
 0x20b   :  { %435 = vsyncpa [#allocation6 + $0x1], 1 }
 0x20c   :  { %436 = vsyncpa [#allocation9], 1 }
 0x20d   :  { %438 = vsyncpa [#allocation9 + $0x1], 1 }
 0x20e   :  { %439 = vsyncpa [#allocation7], 1 }
 0x20f   :  { %441 = vsyncpa [#allocation7 + $0x1], 1 }

</bundles_post_ra>
